<compile_context>
chip_gen: v7x
topology: tpu7x:2x2x1
jax: 0.10.0
libtpu: 0.0.40
codegen_flags: <defaults>
</compile_context>

<pallas_src>
import jax
import jax.numpy as jnp
from jax.experimental import pallas as pl
from jax.experimental.pallas import tpu as pltpu


def _allen_cahn_kernel(d_ref, u_ref, out_ref):
    """One (TR, L) row-tile of the Allen-Cahn RHS.

    d_ref   : SMEM (1, 1) float32 -- precomputed sigmoid(d_org)*0.01/dx^2.
    u_ref   : VMEM (TR, L) float32 -- state tile (spans the FULL L extent).
    out_ref : VMEM (TR, L) float32 -- dU/dt tile.
    """
    d_eff = d_ref[0, 0]
    u = u_ref[...]
    L = u.shape[1]

    # Circular neighbors along the lane (last) axis via XLU lane rotation.
    # (Laplacian is symmetric in the two neighbors, so the rotation-direction
    #  convention is irrelevant: we just need shifts of +1 and -1 mod L.)
    u_a = pltpu.roll(u, shift=1, axis=1)
    u_b = pltpu.roll(u, shift=L - 1, axis=1)

    out_ref[...] = d_eff * (u_a + u_b - 2.0 * u) + 5.0 * u - 5.0 * (u * u * u)


def _vmem_plan():
    """Return (double-buffered in+out footprint budget, vmem_limit_bytes)."""
    try:
        phys = pltpu.get_tpu_info().vmem_capacity_bytes
    except Exception:
        phys = 64 << 20  # assume the smallest (v7x-class) VMEM if query fails
    if phys >= (128 << 20):          # v5e / v6e: 128 MiB physical VMEM
        return 48 << 20, 64 << 20
    return 40 << 20, 48 << 20        # v7x: 64 MiB physical per TensorCore


def _choose_row_tile(R, L, footprint_budget_bytes):
    """Row tile: sized by bytes, multiple of 8, and giving >= 2 grid steps."""
    if R < 16:
        # Single full-extent block (block dim == array dim, so the 8-sublane
        # divisibility rule does not apply). No padding needed.
        return R
    # footprint ~= 2 arrays (in+out) x 2 buffers x block_bytes
    max_block_bytes = footprint_budget_bytes // 4
    cap = max(8, (max_block_bytes // (4 * L)) // 8 * 8)
    # Cap at ceil(R/2) rounded up to a multiple of 8 so grid >= 2 (v7x megacore).
    half8 = ((-(-R // 2)) + 7) // 8 * 8
    return min(cap, half8)


def allen_cahn_forward(state, d_org, dx):
    """state: (B, C, L) float32 (C == 1 in the module).  Returns dU/dt."""
    B, C, L = state.shape
    R = B * C
    u2d = state.reshape(R, L).astype(jnp.float32)

    # Fold sigmoid, the 0.01 scale and 1/dx^2 into one precomputed scalar.
    d_eff = jax.nn.sigmoid(jnp.asarray(d_org, jnp.float32)) * jnp.float32(
        0.01 / (dx * dx)
    )
    d_in = jnp.reshape(d_eff, (1, 1)).astype(jnp.float32)

    footprint_budget, vmem_limit = _vmem_plan()
    tr = _choose_row_tile(R, L, footprint_budget)
    grid = (pl.cdiv(R, tr),)

    out2d = pl.pallas_call(
        _allen_cahn_kernel,
        out_shape=jax.ShapeDtypeStruct((R, L), jnp.float32),
        grid=grid,
        in_specs=[
            # Scalar parameter lives in SMEM, whole array every grid step.
            pl.BlockSpec(memory_space=pltpu.MemorySpace.SMEM),
            # Row-tiled state; full L extent per block (circular correctness).
            # If tr does not divide R, the ragged last block uses Pallas'
            # built-in OOB handling (padded reads, masked writes) -- no
            # wrapper-side pad/slice copies.
            pl.BlockSpec((tr, L), lambda i: (i, 0)),
        ],
        out_specs=pl.BlockSpec((tr, L), lambda i: (i, 0)),
        compiler_params=pltpu.CompilerParams(
            dimension_semantics=("parallel",),
            vmem_limit_bytes=vmem_limit,
        ),
        cost_estimate=pl.CostEstimate(
            flops=9 * R * L,
            transcendentals=0,
            bytes_accessed=2 * R * L * 4 + 4,
        ),
    )(d_in, u2d)

    return out2d.reshape(B, C, L)


def allen_cahn_reference(state, d_org, dx):
    """Pure-JAX reference mirroring the PyTorch forward (for validation)."""
    d = jax.nn.sigmoid(jnp.asarray(d_org, jnp.float32)) * 0.01
    u = state
    u_left = jnp.roll(u, 1, axis=-1)
    u_right = jnp.roll(u, -1, axis=-1)
    delta_u = (u_left - 2.0 * u + u_right) / (dx * dx)
    return d * delta_u + 5.0 * u - 5.0 * u ** 3


if __name__ == "__main__":
    # Deterministic parameter init (matches module __init__: d_org = -2.0).
    dx = 2.0 / 128.0
    d_org = jnp.float32(-2.0)
    key = jax.random.PRNGKey(0)

    # Primary small example consistent with the module: batch=4, channels=1
    # (conv1d weight is (1,1,3)), spatial length=128 (lane-aligned).
    # Extra shapes exercise the multi-step grid and the ragged-row path.
    shapes = [
        (4, 1, 128),    # single full-extent block
        (256, 1, 256),  # multi-step grid, row tile divides R
        (20, 1, 128),   # ragged last row block (R not a multiple of the tile)
    ]

    for i, shp in enumerate(shapes):
        k = jax.random.fold_in(key, i)
        state = jax.random.normal(k, shp, dtype=jnp.float32)
        out = jax.block_until_ready(allen_cahn_forward(state, d_org, dx))
        ref = allen_cahn_reference(state, d_org, dx)
        assert out.shape == state.shape
        assert jnp.allclose(out, ref, atol=1e-4, rtol=1e-5), (
            shp,
            float(jnp.max(jnp.abs(out - ref))),
        )

    print("KERNEL_OK")
</pallas_src>

<mosaic_0001>
module attributes {stable_mosaic.version = 11 : i64} {
  func.func @_allen_cahn_kernel(%arg0: i32, %arg1: memref<1x1xf32, #tpu.memory_space<smem>>, %arg2: memref<4x128xf32, #tpu.memory_space<vmem>>, %arg3: memref<4x128xf32, #tpu.memory_space<vmem>>) attributes {dimension_semantics = [#tpu.dimension_semantics<parallel>], iteration_bounds = array<i64: 1>, scalar_prefetch = 0 : i64, scratch_operands = 0 : i64, tpu.core_type = #tpu.core_type<tc>, window_params = [{transform_indices = @transform_0, window_bounds = array<i64: 1, 1>}, {transform_indices = @transform_1, window_bounds = array<i64: 4, 128>}, {transform_indices = @transform_2, window_bounds = array<i64: 4, 128>}]} {
    %c0 = arith.constant 0 : index
    %c0_0 = arith.constant 0 : index
    %0 = memref.load %arg1[%c0, %c0_0] : memref<1x1xf32, #tpu.memory_space<smem>>
    %c0_1 = arith.constant 0 : index
    %c0_2 = arith.constant 0 : index
    %1 = vector.load %arg2[%c0_1, %c0_2] : memref<4x128xf32, #tpu.memory_space<vmem>>, vector<4x128xf32>
    %c1_i32 = arith.constant 1 : i32
    %2 = tpu.dynamic_rotate %1 by %c1_i32 dim 1 : vector<4x128xf32>, i32 -> vector<4x128xf32>
    %c127_i32 = arith.constant 127 : i32
    %3 = tpu.dynamic_rotate %1 by %c127_i32 dim 1 : vector<4x128xf32>, i32 -> vector<4x128xf32>
    %4 = arith.addf %2, %3 : vector<4x128xf32>
    %cst = arith.constant 2.000000e+00 : f32
    %5 = vector.broadcast %cst : f32 to vector<4x128xf32>
    %6 = arith.mulf %5, %1 : vector<4x128xf32>
    %7 = arith.subf %4, %6 : vector<4x128xf32>
    %8 = vector.broadcast %0 : f32 to vector<4x128xf32>
    %9 = arith.mulf %8, %7 : vector<4x128xf32>
    %cst_3 = arith.constant 5.000000e+00 : f32
    %10 = vector.broadcast %cst_3 : f32 to vector<4x128xf32>
    %11 = arith.mulf %10, %1 : vector<4x128xf32>
    %12 = arith.addf %9, %11 : vector<4x128xf32>
    %13 = arith.mulf %1, %1 : vector<4x128xf32>
    %14 = arith.mulf %13, %1 : vector<4x128xf32>
    %cst_4 = arith.constant 5.000000e+00 : f32
    %15 = vector.broadcast %cst_4 : f32 to vector<4x128xf32>
    %16 = arith.mulf %15, %14 : vector<4x128xf32>
    %17 = arith.subf %12, %16 : vector<4x128xf32>
    %c0_5 = arith.constant 0 : index
    %c0_6 = arith.constant 0 : index
    %18 = vector.load %arg3[%c0_5, %c0_6] : memref<4x128xf32, #tpu.memory_space<vmem>>, vector<4x128xf32>
    tpu.vector_store %arg3[%c0_5, %c0_6], %17 {strides = array<i32>} : memref<4x128xf32, #tpu.memory_space<vmem>>, vector<4x128xf32>,
    return
  }
  func.func @transform_0(%arg0: i32) -> (i32, i32) {
    %c0_i32 = arith.constant 0 : i32
    %c0_i32_0 = arith.constant 0 : i32
    %c0_i32_1 = arith.constant 0 : i32
    return %c0_i32, %c0_i32_0 : i32, i32
  }
  func.func @transform_1(%arg0: i32) -> (i32, i32) {
    %c0_i32 = arith.constant 0 : i32
    %c0_i32_0 = arith.constant 0 : i32
    return %arg0, %c0_i32 : i32, i32
  }
  func.func @transform_2(%arg0: i32) -> (i32, i32) {
    %c0_i32 = arith.constant 0 : i32
    %c0_i32_0 = arith.constant 0 : i32
    return %arg0, %c0_i32 : i32, i32
  }
}

</mosaic_0001>

<bundles_post_ra>
// kernel: tpu_custom_call.1
= control target key start
LH: loop header
LB: loop body
LE: loop exit
PB: predicated region body
PF: predicated region fallthrough
CT: control target
= control target key end

     0   :  { %8 = vsyncpa [#allocation4], 0  ;;  %s156_s0 = inlined_call_operand.<no memory space> [shape: f32[1,1], index: 0, kind: input, shape index: {}]   ;;  %s157_s1 = inlined_call_operand.hbm [shape: f32[4,128], index: 1, kind: input, shape index: {}]   ;;  %s158_s2 = inlined_call_operand.hbm [shape: f32[4,128], index: 2, kind: output, shape index: {}]  }
   0x1   :  { %9 = vsyncpa [#allocation5], 0  ;;  %s110_s9 = smov [#allocation3]   ;;  %s62_s13 = scalar_lea.hbm %s157_s1, 64 }
   0x2   :  { %s18_s10 = sshll.u32 %s110_s9, 4  ;;  %p63_p0 = scmp.ne.s32.totalorder %s157_s1, %s62_s13  ;;  %s19_s10 = int_to_ptr.vmem [resolvable:$true] %s18_s10 }
   0x3   :  { %p66_p1 = scmp.lt.u32.totalorder %s62_s13, %s157_s1 }
   0x5   :  { %p68_p2 = pnand %p66_p1, %p63_p0 }
   0x7   :  { %71 = shalt.err (!%p68_p2)
}
   0x8   :  { %s72_s18 = scalar_lea.vmem %s19_s10, 64  ;;  %p77_p4 = scmp.lt.s32.totalorder %s19_s10, %s19_s10 }
   0x9   :  { %p73_p3 = scmp.ne.s32.totalorder %s19_s10, %s72_s18  ;;  %p78_p5 = scmp.lt.s32.totalorder %s72_s18, %s72_s18 }
   0xb   :  { %p79_p6 = por %p78_p5, %p77_p4 }
   0xd   :  { %p80_p7 = pnand %p79_p6, %p73_p3 }
   0xf   :  { %83 = shalt.err (!%p80_p7)
}
  0x10   :  { %21 = dma.hbm_to_vmem [thread:$0]  %s157_s1, 64, %s19_s10, [#allocation4]  }
  0x11   :  { %106 = dma.done.wait [#allocation4], 64  }
  0x12   :  { %107 = vsyncadd [#allocation4], 4294967232  ;;  %v26_v0 = vld [vmem:[#allocation3] sm:$0xf]  ;;  %s111_s21 = smov 1   ;;  %s112_s22 = smov 127   ;;  %v34_v7 = vstv %s156_s0 }
  0x13   :  { %27 = vrot.lane.b32.xlu0 %v26_v0, %s111_s21  ;;  %v38_v2 = vmul.f32 %v26_v0, %v26_v0  ;;  %v32_v3 = vmul.f32 2.0, %v26_v0  ;;  %v36_v9 = vmul.f32 5.0, %v26_v0  ;;  %s113_s1 = smov [#allocation6]  }
  0x14   :  { %s49_s25 = sshll.u32 %s113_s1, 4  ;;  %s50_s25 = int_to_ptr.vmem [resolvable:$true] %s49_s25 }
  0x15   :  { %v39_v6 = vmul.f32 %v38_v2, %v26_v0  ;;  %s84_s26 = scalar_lea.vmem %s50_s25, 64  ;;  %p89_p9 = scmp.lt.s32.totalorder %s50_s25, %s50_s25 }
  0x16   :  { %p85_p8 = scmp.ne.s32.totalorder %s50_s25, %s84_s26  ;;  %p90_p10 = scmp.lt.s32.totalorder %s84_s26, %s84_s26 }
  0x17   :  { %29 = vrot.lane.b32.xlu0 %v26_v0, %s112_s22  ;;  %v40_v11 = vmul.f32 5.0, %v39_v6 }
  0x18   :  { %p91_p11 = por %p90_p10, %p89_p9 }
  0x1a   :  { %p92_p12 = pnand %p91_p11, %p85_p8 }
  0x85   :  { %v28_v1 = vpop.permute.xlu0 %27 }
  0x89   :  { %v30_v4 = vpop.permute.xlu0 %29 }
  0x8a   :  { %v31_v5 = vadd.f32 %v30_v4, %v28_v1 }
  0x8c   :  { %v33_v8 = vsub.f32 %v31_v5, %v32_v3 }
  0x8e   :  { %v35_v10 = vmul.f32 %v34_v7, %v33_v8 }
  0x90   :  { %v37_v12 = vadd.f32 %v36_v9, %v35_v10 }
  0x92   :  { %v41_v13 = vsub.f32 %v37_v12, %v40_v11 }
  0x94   :  { %42 = vst [vmem:[#allocation6] sm:$0xf] %v41_v13 }
  0x95   :  { %95 = shalt.err (!%p92_p12)
}
  0x96   :  { %s96_s0 = scalar_lea.hbm %s158_s2, 64 }
  0x97   :  { %p97_p13 = scmp.ne.s32.totalorder %s158_s2, %s96_s0  ;;  %p100_p0 = scmp.lt.u32.totalorder %s96_s0, %s158_s2 }
  0x99   :  { %p102_p1 = pnand %p100_p0, %p97_p13 }
  0x9b   :  { %105 = shalt.err (!%p102_p1)
}
  0x9c   :  { %52 = dma.vmem_to_hbm [thread:$0]  %s50_s25, 64, %s158_s2, [#allocation5]  }
  0x9d   :  { %108 = dma.done.wait [#allocation5], 64  }
  0x9e   :  { %109 = vsyncadd [#allocation5], 4294967232 }
  0x9f   :  { %56 = vsyncpa [#allocation4], 1 }
  0xa0   :  { %57 = vsyncpa [#allocation5], 1 }

</bundles_post_ra>
